<compile_context>
chip_gen: v7x
topology: tpu7x:2x2x1
jax: 0.10.0
libtpu: 0.0.40
codegen_flags: <defaults>
</compile_context>

<pallas_src>
import functools

import jax
import jax.numpy as jnp
from jax.experimental import pallas as pl
from jax.experimental.pallas import tpu as pltpu

_LANE = 128     # lane width (last dim)
_SUBLANE = 8    # sublane width (second-to-last dim)


def _round_up(x, m):
    return (x + m - 1) // m * m


def _apply_activation(y, activation):
    if activation == "relu":
        return jnp.maximum(y, 0.0)
    elif activation == "tanh":
        return jnp.tanh(y)
    elif activation == "gelu":
        # PyTorch nn.GELU default is the exact erf formulation.
        return jax.nn.gelu(y, approximate=False)
    else:
        raise ValueError(f"unsupported activation: {activation}")


# ---------------------------------------------------------------------------
# Fused Pallas kernel: whole MLP stack for one batch tile.
#   refs = (x_ref, w0_ref, b0_ref, w1_ref, b1_ref, ..., o_ref)
#   x_ref: [tm, in_pad] f32; w_l: [in_pad_l, out_pad_l] bf16 (resident);
#   b_l:   [1, out_pad_l] f32; o_ref: [tm, out_pad_last] f32.
# Intermediate activations stay on-chip (never written to HBM).
# ---------------------------------------------------------------------------
def _fused_mlp_kernel(*refs, n_layers, activation):
    x_ref = refs[0]
    o_ref = refs[-1]
    wb_refs = refs[1:-1]

    x = x_ref[...].astype(jnp.float32)          # [tm, in_pad]
    for layer in range(n_layers):
        w = wb_refs[2 * layer][...]             # [in_pad, out_pad] bf16 (resident block)
        b = wb_refs[2 * layer + 1][...]         # [1, out_pad] f32
        # bf16 matmul on the MXU, f32 accumulation.
        y = jnp.dot(x.astype(jnp.bfloat16), w, preferred_element_type=jnp.float32)
        # Epilogue (bias + activation) in f32 (v5e VPU/EUP have no bf16 path).
        x = _apply_activation(y + b, activation)
        # Dropout: identity at inference time.
        # TODO(synk): training-mode dropout (pltpu.prng_random_bits mask) not implemented.
    o_ref[...] = x.astype(o_ref.dtype)


# ---------------------------------------------------------------------------
# NormalArtist in JAX: config, parameter init, padding, forward.
# ---------------------------------------------------------------------------
class ModelConfig:
    def __init__(self, input_size, encoder_layers, activation="relu", dropout=0.1):
        self.input_size = input_size
        self.encoder_layers = encoder_layers
        self.activation = activation
        self.dropout = dropout


def init_normal_artist_params(key, config):
    """Returns a list of (W[in,out] f32, b[1,out] f32) per encoder layer.

    W is stored transposed relative to nn.Linear ([out,in]) so the kernel computes
    y = x @ W + b directly on the MXU.  Init mirrors PyTorch's default U(-1/sqrt(in), 1/sqrt(in)).
    """
    params = []
    in_feats = [config.input_size] + list(config.encoder_layers[:-1])
    out_feats = list(config.encoder_layers)
    for in_f, out_f in zip(in_feats, out_feats):
        key, kw, kb = jax.random.split(key, 3)
        bound = 1.0 / (in_f ** 0.5)
        w = jax.random.uniform(kw, (in_f, out_f), jnp.float32, -bound, bound)
        b = jax.random.uniform(kb, (1, out_f), jnp.float32, -bound, bound)
        params.append((w, b))
    return params


def _prepare_padded_params(params):
    """Zero-pad every layer to (128-multiple, 128-multiple); weights cast to bf16."""
    padded = []
    for w, b in params:
        in_f, out_f = w.shape
        in_p = _round_up(in_f, _LANE)
        out_p = _round_up(out_f, _LANE)
        w_p = jnp.zeros((in_p, out_p), jnp.bfloat16).at[:in_f, :out_f].set(
            w.astype(jnp.bfloat16))
        b_p = jnp.zeros((1, out_p), jnp.float32).at[:, :out_f].set(b)
        padded.append((w_p, b_p))
    return padded


def normal_artist_forward(params, state, *, activation="relu"):
    """state: [batch, input_size] f32 -> [batch, encoder_layers[-1]] f32."""
    batch, in_feat = state.shape
    n_layers = len(params)
    out_feat = params[-1][0].shape[1]

    padded = _prepare_padded_params(params)
    in_p = padded[0][0].shape[0]
    out_p = padded[-1][0].shape[1]

    # Batch tile: multiple of 8 sublanes, capped so big batches pipeline over the grid.
    tm = min(_round_up(batch, _SUBLANE), 256)
    batch_p = _round_up(batch, tm)

    # Zero-pad the input; zero padding propagates exactly through relu/tanh/gelu.
    x_p = jnp.zeros((batch_p, in_p), jnp.float32).at[:batch, :in_feat].set(state)

    # Conservative VMEM budget guard: x/out tiles + all resident weights/biases,
    # double-buffered.  Stays well under the default scoped VMEM limit.
    resident_bytes = 2 * (tm * in_p * 4 + tm * out_p * 4)
    for w_p, b_p in padded:
        resident_bytes += 2 * (w_p.size * 2 + b_p.size * 4)
    # TODO(synk): add a K/N-tiled (grid-reduction) fallback path for layer widths
    #             whose resident weights exceed the VMEM budget (esp. v7x's 64 MiB).
    assert resident_bytes < 12 * 1024 * 1024, (
        f"fused-MLP resident footprint {resident_bytes} B exceeds VMEM budget; "
        f"a tiled fallback is required for these layer sizes")

    grid = (batch_p // tm,)

    flat_inputs = [x_p]
    in_specs = [pl.BlockSpec((tm, in_p), lambda i: (i, 0))]
    for w_p, b_p in padded:
        flat_inputs.append(w_p)
        flat_inputs.append(b_p)
        # Constant block index -> weights/biases stay resident across batch tiles.
        in_specs.append(pl.BlockSpec(w_p.shape, lambda i: (0, 0)))
        in_specs.append(pl.BlockSpec(b_p.shape, lambda i: (0, 0)))

    kernel = functools.partial(_fused_mlp_kernel, n_layers=n_layers,
                               activation=activation)

    out_padded = pl.pallas_call(
        kernel,
        out_shape=jax.ShapeDtypeStruct((batch_p, out_p), jnp.float32),
        grid=grid,
        in_specs=in_specs,
        out_specs=pl.BlockSpec((tm, out_p), lambda i: (i, 0)),
        compiler_params=pltpu.CompilerParams(
            # Batch tiles are independent -> shard across v7x's two TensorCores.
            dimension_semantics=("parallel",),
        ),
    )(*flat_inputs)

    return out_padded[:batch, :out_feat]


if __name__ == "__main__":
    config = ModelConfig(input_size=32, encoder_layers=[64, 32],
                         activation="relu", dropout=0.1)

    key = jax.random.PRNGKey(0)
    key_params, key_x = jax.random.split(key)

    params = init_normal_artist_params(key_params, config)
    state = jax.random.normal(key_x, (8, config.input_size), jnp.float32)  # [batch=8, 32]

    fwd = jax.jit(functools.partial(normal_artist_forward,
                                    activation=config.activation))
    out = fwd(params, state)
    out = jax.block_until_ready(out)

    assert out.shape == (8, config.encoder_layers[-1]), out.shape
    assert out.dtype == jnp.float32

    # Reference with matching bf16 matmul precision (f32 accumulation + f32 epilogue).
    ref = state
    for w, b in params:
        ref = jnp.maximum(
            jnp.dot(ref.astype(jnp.bfloat16), w.astype(jnp.bfloat16),
                    preferred_element_type=jnp.float32) + b, 0.0)
    assert jnp.allclose(out, ref, atol=1e-4, rtol=1e-4), float(jnp.max(jnp.abs(out - ref)))

    # Loose sanity check against the pure-f32 reference.
    ref32 = state
    for w, b in params:
        ref32 = jnp.maximum(ref32 @ w + b, 0.0)
    assert jnp.allclose(out, ref32, atol=5e-2, rtol=5e-2)

    print("KERNEL_OK")
</pallas_src>

<mosaic_0001>
module attributes {stable_mosaic.version = 11 : i64} {
  func.func @_fused_mlp_kernel(%arg0: i32, %arg1: memref<8x128xf32, #tpu.memory_space<vmem>>, %arg2: memref<128x128xbf16, #tpu.memory_space<vmem>>, %arg3: memref<1x128xf32, #tpu.memory_space<vmem>>, %arg4: memref<128x128xbf16, #tpu.memory_space<vmem>>, %arg5: memref<1x128xf32, #tpu.memory_space<vmem>>, %arg6: memref<8x128xf32, #tpu.memory_space<vmem>>) attributes {dimension_semantics = [#tpu.dimension_semantics<parallel>], iteration_bounds = array<i64: 1>, scalar_prefetch = 0 : i64, scratch_operands = 0 : i64, tpu.core_type = #tpu.core_type<tc>, window_params = [{transform_indices = @transform_0, window_bounds = array<i64: 8, 128>}, {pipeline_mode = #tpu.pipeline_mode<synchronous>, transform_indices = @transform_1, window_bounds = array<i64: 128, 128>}, {pipeline_mode = #tpu.pipeline_mode<synchronous>, transform_indices = @transform_2, window_bounds = array<i64: 1, 128>}, {pipeline_mode = #tpu.pipeline_mode<synchronous>, transform_indices = @transform_3, window_bounds = array<i64: 128, 128>}, {pipeline_mode = #tpu.pipeline_mode<synchronous>, transform_indices = @transform_4, window_bounds = array<i64: 1, 128>}, {transform_indices = @transform_5, window_bounds = array<i64: 8, 128>}]} {
    %c0 = arith.constant 0 : index
    %c0_0 = arith.constant 0 : index
    %0 = vector.load %arg1[%c0, %c0_0] : memref<8x128xf32, #tpu.memory_space<vmem>>, vector<8x128xf32>
    %c0_1 = arith.constant 0 : index
    %c0_2 = arith.constant 0 : index
    %1 = vector.load %arg2[%c0_1, %c0_2] : memref<128x128xbf16, #tpu.memory_space<vmem>>, vector<128x128xbf16>
    %c0_3 = arith.constant 0 : index
    %c0_4 = arith.constant 0 : index
    %2 = vector.load %arg3[%c0_3, %c0_4] : memref<1x128xf32, #tpu.memory_space<vmem>>, vector<1x128xf32>
    %3 = arith.truncf %0 : vector<8x128xf32> to vector<8x128xbf16>
    %cst = arith.constant dense<0.000000e+00> : vector<8x128xf32>
    %4 = tpu.matmul %3, %1, %cst {dimension_numbers = #tpu.dot_dimension_numbers<[1], [0], [0], [1], [0, 0, 1, 1], [], []>} : vector<8x128xbf16>, vector<128x128xbf16>, vector<8x128xf32> -> vector<8x128xf32>
    %5 = vector.broadcast %2 : vector<1x128xf32> to vector<8x128xf32>
    %6 = arith.addf %4, %5 : vector<8x128xf32>
    %cst_5 = arith.constant 0.000000e+00 : f32
    %7 = vector.broadcast %cst_5 : f32 to vector<8x128xf32>
    %8 = arith.maximumf %6, %7 : vector<8x128xf32>
    %c0_6 = arith.constant 0 : index
    %c0_7 = arith.constant 0 : index
    %9 = vector.load %arg4[%c0_6, %c0_7] : memref<128x128xbf16, #tpu.memory_space<vmem>>, vector<128x128xbf16>
    %c0_8 = arith.constant 0 : index
    %c0_9 = arith.constant 0 : index
    %10 = vector.load %arg5[%c0_8, %c0_9] : memref<1x128xf32, #tpu.memory_space<vmem>>, vector<1x128xf32>
    %11 = arith.truncf %8 : vector<8x128xf32> to vector<8x128xbf16>
    %cst_10 = arith.constant dense<0.000000e+00> : vector<8x128xf32>
    %12 = tpu.matmul %11, %9, %cst_10 {dimension_numbers = #tpu.dot_dimension_numbers<[1], [0], [0], [1], [0, 0, 1, 1], [], []>} : vector<8x128xbf16>, vector<128x128xbf16>, vector<8x128xf32> -> vector<8x128xf32>
    %13 = vector.broadcast %10 : vector<1x128xf32> to vector<8x128xf32>
    %14 = arith.addf %12, %13 : vector<8x128xf32>
    %cst_11 = arith.constant 0.000000e+00 : f32
    %15 = vector.broadcast %cst_11 : f32 to vector<8x128xf32>
    %16 = arith.maximumf %14, %15 : vector<8x128xf32>
    %c0_12 = arith.constant 0 : index
    %c0_13 = arith.constant 0 : index
    %17 = vector.load %arg6[%c0_12, %c0_13] : memref<8x128xf32, #tpu.memory_space<vmem>>, vector<8x128xf32>
    tpu.vector_store %arg6[%c0_12, %c0_13], %16 {strides = array<i32>} : memref<8x128xf32, #tpu.memory_space<vmem>>, vector<8x128xf32>,
    return
  }
  func.func @transform_0(%arg0: i32) -> (i32, i32) {
    %c0_i32 = arith.constant 0 : i32
    %c0_i32_0 = arith.constant 0 : i32
    return %arg0, %c0_i32 : i32, i32
  }
  func.func @transform_1(%arg0: i32) -> (i32, i32) {
    %c0_i32 = arith.constant 0 : i32
    %c0_i32_0 = arith.constant 0 : i32
    %c0_i32_1 = arith.constant 0 : i32
    return %c0_i32, %c0_i32_0 : i32, i32
  }
  func.func @transform_2(%arg0: i32) -> (i32, i32) {
    %c0_i32 = arith.constant 0 : i32
    %c0_i32_0 = arith.constant 0 : i32
    %c0_i32_1 = arith.constant 0 : i32
    return %c0_i32, %c0_i32_0 : i32, i32
  }
  func.func @transform_3(%arg0: i32) -> (i32, i32) {
    %c0_i32 = arith.constant 0 : i32
    %c0_i32_0 = arith.constant 0 : i32
    %c0_i32_1 = arith.constant 0 : i32
    return %c0_i32, %c0_i32_0 : i32, i32
  }
  func.func @transform_4(%arg0: i32) -> (i32, i32) {
    %c0_i32 = arith.constant 0 : i32
    %c0_i32_0 = arith.constant 0 : i32
    %c0_i32_1 = arith.constant 0 : i32
    return %c0_i32, %c0_i32_0 : i32, i32
  }
  func.func @transform_5(%arg0: i32) -> (i32, i32) {
    %c0_i32 = arith.constant 0 : i32
    %c0_i32_0 = arith.constant 0 : i32
    return %arg0, %c0_i32 : i32, i32
  }
}

</mosaic_0001>

<bundles_post_ra>
// kernel: normal_artist_forward.1
= control target key start
LH: loop header
LB: loop body
LE: loop exit
PB: predicated region body
PF: predicated region fallthrough
CT: control target
= control target key end

     0   :  { %v383_v1 = vmov 0.0   ;;  %vm384_vm0 = vmmov 0   ;;  %s485_s0 = inlined_call_operand.vmem [shape: f32[8,128], index: 0, kind: input, shape index: {}]   ;;  %s486_s1 = inlined_call_operand.vmem [shape: bf16[128,128], index: 1, kind: input, shape index: {}]   ;;  %s487_s2 = inlined_call_operand.vmem [shape: f32[1,128], index: 2, kind: input, shape index: {}]   ;;  %s488_s3 = inlined_call_operand.vmem [shape: bf16[128,128], index: 3, kind: input, shape index: {}]   ;;  %s489_s4 = inlined_call_operand.vmem [shape: f32[1,128], index: 4, kind: input, shape index: {}]   ;;  %s490_s5 = inlined_call_operand.hbm [shape: f32[8,128], index: 5, kind: output, shape index: {}]  }
   0x1   :  { %v343_v0 = vld [vmem:[%s486_s1] sm:$0xff]   ;;  %300 = vmatprep.subr.bf16.mxu0 %v383_v1  ;;  %320 = vmatprep.subr.bf16.mxu1 %v383_v1  ;;  %v344_v2 = vld [vmem:[%s486_s1 + $0x8] sm:$0xff]   ;;  %v345_v3 = vld [vmem:[%s486_s1 + $0x10] sm:$0xff]  }
   0x2   :  { %301 = vmatpush3.bf16.msra.mxu0 %v343_v0  ;;  %316 = vmatprep.mubr.msk.bf16.mxu0 %vm384_vm0, %v383_v1  ;;  %v351_v4 = vld [vmem:[%s488_s3] sm:$0xff]   ;;  %v346_v5 = vld [vmem:[%s486_s1 + $0x18] sm:$0xff]   ;;  %v352_v6 = vld [vmem:[%s488_s3 + $0x8] sm:$0xff]  }
   0x3   :  { %302 = vmatprep.subr.bf16.mxu0 %v383_v1  ;;  %336 = vmatprep.mubr.msk.bf16.mxu1 %vm384_vm0, %v383_v1  ;;  %v347_v7 = vld [vmem:[%s486_s1 + $0x20] sm:$0xff]   ;;  %v353_v8 = vld [vmem:[%s488_s3 + $0x10] sm:$0xff]  }
   0x4   :  { %321 = vmatpush3.bf16.msra.mxu1 %v351_v4 }
   0x5   :  { %322 = vmatprep.subr.bf16.mxu1 %v383_v1 }
   0x6   :  { %303 = vmatpush3.bf16.msra.mxu0 %v344_v2 }
   0x7   :  { %304 = vmatprep.subr.bf16.mxu0 %v383_v1 }
   0x8   :  { %323 = vmatpush3.bf16.msra.mxu1 %v352_v6 }
   0x9   :  { %324 = vmatprep.subr.bf16.mxu1 %v383_v1 }
   0xa   :  { %305 = vmatpush3.bf16.msra.mxu0 %v345_v3 }
   0xb   :  { %306 = vmatprep.subr.bf16.mxu0 %v383_v1 }
   0xe   :  { %307 = vmatpush3.bf16.msra.mxu0 %v346_v5 }
   0xf   :  { %308 = vmatprep.subr.bf16.mxu0 %v383_v1 }
  0x10   :  { %10 = vsyncpa [#allocation3], 0  ;;  %v348_v9 = vld [vmem:[%s486_s1 + $0x28] sm:$0xff]   ;;  %325 = vmatpush3.bf16.msra.mxu1 %v353_v8  ;;  %v354_v10 = vld [vmem:[%s488_s3 + $0x18] sm:$0xff]   ;;  %s385_s29 = smov [#allocation2]  }
  0x11   :  { %326 = vmatprep.subr.bf16.mxu1 %v383_v1  ;;  %v349_v11 = vld [vmem:[%s486_s1 + $0x30] sm:$0xff]   ;;  %v355_v12 = vld [vmem:[%s488_s3 + $0x20] sm:$0xff]   ;;  %v350_v13 = vld [vmem:[%s486_s1 + $0x38] sm:$0xff]  }
  0x12   :  { %309 = vmatpush3.bf16.msra.mxu0 %v347_v7  ;;  %v22_v14 = vld [vmem:[%s485_s0] sm:$0xff]  ;;  %v356_v15 = vld [vmem:[%s488_s3 + $0x28] sm:$0xff]   ;;  %v357_v17 = vld [vmem:[%s488_s3 + $0x30] sm:$0xff]  }
  0x13   :  { %310 = vmatprep.subr.bf16.mxu0 %v383_v1  ;;  %v40_v16 = vpack.c.bf16 %v22_v14, %v22_v14  ;;  %v358_v18 = vld [vmem:[%s488_s3 + $0x38] sm:$0xff]   ;;  %v264_v19 = vld [vmem:[%s487_s2] ss:$0 sm:$0xff]  ;;  %s256_s3 = sshll.u32 %s385_s29, 4  ;;  %s257_s3 = int_to_ptr.vmem [resolvable:$true] %s256_s3 }
  0x14   :  { %327 = vmatpush3.bf16.msra.mxu1 %v354_v10  ;;  %v273_v27 = vld [vmem:[%s489_s4] ss:$0 sm:$0xff]  ;;  %s359_s2 = scalar_lea.vmem %s257_s3, 128  ;;  %p364_p1 = scmp.lt.s32.totalorder %s257_s3, %s257_s3 }
  0x15   :  { %328 = vmatprep.subr.bf16.mxu1 %v383_v1  ;;  %p360_p0 = scmp.ne.s32.totalorder %s257_s3, %s359_s2  ;;  %p365_p2 = scmp.lt.s32.totalorder %s359_s2, %s359_s2 }
  0x16   :  { %311 = vmatpush3.bf16.msra.mxu0 %v348_v9 }
  0x17   :  { %312 = vmatprep.subr.bf16.mxu0 %v383_v1  ;;  %p366_p3 = por %p365_p2, %p364_p1 }
  0x18   :  { %329 = vmatpush3.bf16.msra.mxu1 %v355_v12 }
  0x19   :  { %330 = vmatprep.subr.bf16.mxu1 %v383_v1  ;;  %p367_p4 = pnand %p366_p3, %p360_p0 }
  0x1a   :  { %313 = vmatpush3.bf16.msra.mxu0 %v349_v11 }
  0x1b   :  { %314 = vmatprep.subr.bf16.mxu0 %v383_v1 }
  0x1c   :  { %331 = vmatpush3.bf16.msra.mxu1 %v356_v15 }
  0x1d   :  { %332 = vmatprep.subr.bf16.mxu1 %v383_v1 }
  0x1e   :  { %315 = vmatpush3.bf16.msra.mxu0 %v350_v13 }
  0x20   :  { %333 = vmatpush3.bf16.msra.mxu1 %v357_v17 }
  0x21   :  { %317 = vmatmul.mubr.bf16.vlgmr.msra.gmra.mrb[0].mxu0 %v40_v16  ;;  %334 = vmatprep.subr.bf16.mxu1 %v383_v1 }
  0x24   :  { %335 = vmatpush3.bf16.msra.mxu1 %v358_v18 }
  0xf4   :  { %v129_v20 = vpop.f32.mrb[0].mxu0 }
  0xf5   :  { %v130_v21 = vadd.f32 %v264_v19, %v129_v20  ;;  %v318_v22 = vpop.f32.mrb[1].mxu0 }
  0xf6   :  { %v132_v23 = vpop.f32.mrb[2].mxu0 }
  0xf7   :  { %v135_v24 = vmax.f32 %v130_v21, 0.0  ;;  %v319_v25 = vpop.f32.mrb[3].mxu0 }
  0xf9   :  { %v153_v26 = vpack.c.bf16 %v135_v24, %v135_v24 }
  0xfb   :  { %337 = vmatmul.mubr.bf16.vlgmr.msra.gmra.mrb[0].mxu1 %v153_v26 }
 0x1ce   :  { %v242_v28 = vpop.f32.mrb[0].mxu1 }
 0x1cf   :  { %v243_v29 = vadd.f32 %v273_v27, %v242_v28  ;;  %v338_v30 = vpop.f32.mrb[1].mxu1 }
 0x1d0   :  { %v245_v31 = vpop.f32.mrb[2].mxu1 }
 0x1d1   :  { %v248_v32 = vmax.f32 %v243_v29, 0.0  ;;  %v339_v33 = vpop.f32.mrb[3].mxu1 }
 0x1d3   :  { %249 = vst [vmem:[#allocation2] sm:$0xff] %v248_v32 }
 0x1d4   :  { %370 = shalt.err (!%p367_p4)
}
 0x1d5   :  { %s371_s4 = scalar_lea.hbm %s490_s5, 128 }
 0x1d6   :  { %p372_p5 = scmp.ne.s32.totalorder %s490_s5, %s371_s4  ;;  %p375_p6 = scmp.lt.u32.totalorder %s371_s4, %s490_s5 }
 0x1d8   :  { %p377_p7 = pnand %p375_p6, %p372_p5 }
 0x1da   :  { %380 = shalt.err (!%p377_p7)
}
 0x1db   :  { %259 = dma.vmem_to_hbm [thread:$0]  %s257_s3, 128, %s490_s5, [#allocation3]  }
 0x1dc   :  { %381 = dma.done.wait [#allocation3], 128  }
 0x1dd   :  { %382 = vsyncadd [#allocation3], 4294967168 }
 0x1de   :  { %263 = vsyncpa [#allocation3], 1 }

</bundles_post_ra>
